<compile_context>
chip_gen: v7x
topology: tpu7x:2x2x1
jax: 0.10.0
libtpu: 0.0.40
codegen_flags: <defaults>
</compile_context>

<pallas_src>
import jax
import jax.numpy as jnp
from jax.experimental import pallas as pl
from jax.experimental.pallas import tpu as pltpu


def _round_up(x: int, m: int) -> int:
    return (x + m - 1) // m * m


def _cdiv(a: int, b: int) -> int:
    return -(-a // b)


def _vmem_capacity_bytes() -> int:
    """Physical VMEM per core; conservative (v7x) fallback if query fails."""
    try:
        return int(pltpu.get_tpu_info().vmem_capacity_bytes)
    except Exception:
        return 64 * 1024 * 1024


def _make_mlp_kernel(num_hidden: int):
    """Fused MLP kernel for `num_hidden` hidden layers.

    Ref order: x, (w0, b0), ..., (w_out, b_out), out
    x/weights are bf16; biases are f32 (1, out_pad); output is f32.
    """

    def kernel(*refs):
        x_ref = refs[0]
        o_ref = refs[-1]
        params = refs[1:-1]

        h = x_ref[...]                                   # bf16 (TILE_B, in_pad)

        # Hidden layers: Linear -> ReLU. Dropout is identity in eval mode.
        # TODO(synk): training-mode stochastic dropout not implemented.
        for i in range(num_hidden):
            w = params[2 * i][...]                       # bf16 (in_pad, out_pad)
            b = params[2 * i + 1][...]                   # f32  (1, out_pad)
            a = jnp.dot(h, w, preferred_element_type=jnp.float32) + b
            h = jnp.maximum(a, 0.0).astype(jnp.bfloat16)  # bf16 feed for next MXU op

        # Output layer: Linear -> log_softmax along the class axis.
        w_o = params[2 * num_hidden][...]
        b_o = params[2 * num_hidden + 1][...]            # pad lanes carry -1e30
        logits = jnp.dot(h, w_o, preferred_element_type=jnp.float32) + b_o

        m = jnp.max(logits, axis=1, keepdims=True)
        sumexp = jnp.sum(jnp.exp(logits - m), axis=1, keepdims=True)
        offset = m + jnp.log(sumexp)                     # (TILE_B, 1)
        o_ref[...] = (logits - offset).astype(o_ref.dtype)

    return kernel


def my_awesome_model_forward(x, weights, biases):
    """Fused forward pass.

    Args:
      x: (batch, input_size) float32.
      weights: list of (in, out) weight matrices (hidden layers then output).
      biases: list of (out,) bias vectors (hidden layers then output).

    Returns:
      (batch, output_size) log-probabilities, float32.
    """
    num_layers = len(weights)
    num_hidden = num_layers - 1
    batch, in_size = x.shape
    out_size = weights[-1].shape[1]

    # Lane-pad every feature/class dim to a multiple of 128.
    sizes = [in_size] + [w.shape[1] for w in weights]
    padded = [_round_up(s, 128) for s in sizes]
    in_pad, out_pad = padded[0], padded[-1]

    vmem_cap = _vmem_capacity_bytes()
    vmem_limit = min(100 * 1024 * 1024, (vmem_cap * 3) // 4)

    # Batch tile: multiple of 16 (bf16 packs [16,128] per vreg). Keep >= 2 grid
    # steps when batch allows so the "parallel" batch axis can shard across both
    # TensorCores on v7x; bigger tiles (512) on 128 MiB-VMEM v5e/v6e.
    max_tile = 512 if vmem_cap >= 96 * 1024 * 1024 else 256
    if batch <= 16:
        tile_b = _round_up(max(batch, 1), 16)
    else:
        tile_b = min(max_tile, _round_up(_cdiv(batch, 2), 16))
    b_pad = _round_up(batch, tile_b)

    # bf16 activation stream; skip the padding copy entirely when aligned.
    if b_pad == batch and in_pad == in_size:
        x_p = x.astype(jnp.bfloat16)
    else:
        x_p = jnp.zeros((b_pad, in_pad), jnp.bfloat16)
        x_p = x_p.at[:batch, :in_size].set(x.astype(jnp.bfloat16))

    # Pad params. Hidden pads: zero weights + zero bias (ReLU(0)=0 propagates
    # cleanly). Output pads: zero weights + bias -1e30 so log_softmax ignores
    # the pad classes.
    flat_params = []
    for li, (w, b) in enumerate(zip(weights, biases)):
        fi, fo = w.shape
        pi, po = padded[li], padded[li + 1]
        w_p = jnp.zeros((pi, po), jnp.bfloat16)
        w_p = w_p.at[:fi, :fo].set(w.astype(jnp.bfloat16))
        pad_bias = -1e30 if li == num_layers - 1 else 0.0
        b_p = jnp.full((1, po), pad_bias, jnp.float32)
        b_p = b_p.at[0, :fo].set(b.astype(jnp.float32))
        flat_params.append(w_p)
        flat_params.append(b_p)

    kernel = _make_mlp_kernel(num_hidden)
    grid = (b_pad // tile_b,)

    param_bytes = sum(int(p.size) * p.dtype.itemsize for p in flat_params)
    flops = 2 * b_pad * sum(padded[i] * padded[i + 1] for i in range(num_layers))
    bytes_accessed = int(x_p.size) * 2 + param_bytes + b_pad * out_pad * 4
    cost = pl.CostEstimate(flops=flops, transcendentals=b_pad * out_pad,
                           bytes_accessed=bytes_accessed)

    def build_and_run(single_buffer_params: bool):
        param_bufs = 1 if single_buffer_params else 2
        # VMEM budget: params * buffer_count + double-buffered bf16 x tile +
        # double-buffered f32 out tile + intermediate-activation headroom.
        vmem_needed = (param_bytes * param_bufs
                       + 2 * tile_b * in_pad * 2
                       + 2 * tile_b * out_pad * 4
                       + 4 * tile_b * max(padded) * 4)
        assert vmem_needed < vmem_limit, (
            "Fused MLP does not fit VMEM; split into per-layer pallas_calls or "
            "stream weight K-tiles with pltpu.emit_pipeline.")

        def param_spec(shape):
            if single_buffer_params:
                return pl.BlockSpec(shape, lambda i: (0, 0),
                                    pipeline_mode=pl.Buffered(1))
            return pl.BlockSpec(shape, lambda i: (0, 0))

        in_specs = [pl.BlockSpec((tile_b, in_pad), lambda i: (i, 0))]
        for li in range(num_layers):
            pi, po = padded[li], padded[li + 1]
            in_specs.append(param_spec((pi, po)))   # weight: VMEM resident
            in_specs.append(param_spec((1, po)))    # bias:   VMEM resident
        out_spec = pl.BlockSpec((tile_b, out_pad), lambda i: (i, 0))

        out = pl.pallas_call(
            kernel,
            out_shape=jax.ShapeDtypeStruct((b_pad, out_pad), jnp.float32),
            grid=grid,
            in_specs=in_specs,
            out_specs=out_spec,
            compiler_params=pltpu.CompilerParams(
                dimension_semantics=("parallel",),
                vmem_limit_bytes=vmem_limit),
            cost_estimate=cost,
        )(x_p, *flat_params)
        return jax.block_until_ready(out)

    try:
        out_p = build_and_run(single_buffer_params=True)
    except Exception:
        # Fallback for jax versions / lowerings that reject pl.Buffered(1):
        # default double-buffered param specs (same semantics, more VMEM).
        out_p = build_and_run(single_buffer_params=False)

    if b_pad == batch and out_pad == out_size:
        return out_p
    return out_p[:batch, :out_size]


def _reference_forward(x, weights, biases):
    """Pure-JAX reference with matching bf16-operand / f32-accumulate math."""
    h = x.astype(jnp.bfloat16)
    for w, b in zip(weights[:-1], biases[:-1]):
        a = jnp.dot(h, w.astype(jnp.bfloat16),
                    preferred_element_type=jnp.float32) + b.astype(jnp.float32)
        h = jnp.maximum(a, 0.0).astype(jnp.bfloat16)
    logits = jnp.dot(h, weights[-1].astype(jnp.bfloat16),
                     preferred_element_type=jnp.float32) + biases[-1].astype(jnp.float32)
    return jax.nn.log_softmax(logits, axis=1)


def init_params(key, input_size, hidden_layers, output_size):
    """Deterministic init mimicking PyTorch Linear default (uniform +/- 1/sqrt(fan_in))."""
    sizes = [input_size] + list(hidden_layers) + [output_size]
    weights, biases = [], []
    for i in range(len(sizes) - 1):
        fan_in, fan_out = sizes[i], sizes[i + 1]
        key, kw, kb = jax.random.split(key, 3)
        bound = 1.0 / (fan_in ** 0.5)
        # Stored as (in, out) — i.e. already transposed vs. PyTorch's (out, in).
        w = jax.random.uniform(kw, (fan_in, fan_out), jnp.float32, -bound, bound)
        b = jax.random.uniform(kb, (fan_out,), jnp.float32, -bound, bound)
        weights.append(w)
        biases.append(b)
    return weights, biases


if __name__ == "__main__":
    # Small shapes consistent with the module's forward (flat feature input).
    batch = 8
    input_size = 32
    hidden_layers = [64, 32]
    output_size = 10

    key = jax.random.PRNGKey(0)
    key, kx = jax.random.split(key)
    x = jax.random.normal(kx, (batch, input_size), dtype=jnp.float32)

    weights, biases = init_params(key, input_size, hidden_layers, output_size)

    out = my_awesome_model_forward(x, weights, biases)
    out = jax.block_until_ready(out)

    # Sanity checks: shape, log_softmax normalization, agreement with reference.
    assert out.shape == (batch, output_size)
    row_sums = jnp.sum(jnp.exp(out), axis=1)
    assert bool(jnp.all(jnp.abs(row_sums - 1.0) < 1e-4))

    ref = _reference_forward(x, weights, biases)
    assert bool(jnp.all(jnp.abs(out - ref) < 1e-2))

    print("KERNEL_OK")
</pallas_src>

<mosaic_0001>
module attributes {stable_mosaic.version = 11 : i64} {
  func.func @kernel(%arg0: i32, %arg1: memref<16x128xbf16, #tpu.memory_space<vmem>>, %arg2: memref<128x128xbf16, #tpu.memory_space<vmem>>, %arg3: memref<1x128xf32, #tpu.memory_space<vmem>>, %arg4: memref<128x128xbf16, #tpu.memory_space<vmem>>, %arg5: memref<1x128xf32, #tpu.memory_space<vmem>>, %arg6: memref<128x128xbf16, #tpu.memory_space<vmem>>, %arg7: memref<1x128xf32, #tpu.memory_space<vmem>>, %arg8: memref<16x128xf32, #tpu.memory_space<vmem>>) attributes {dimension_semantics = [#tpu.dimension_semantics<parallel>], iteration_bounds = array<i64: 1>, scalar_prefetch = 0 : i64, scratch_operands = 0 : i64, tpu.core_type = #tpu.core_type<tc>, window_params = [{transform_indices = @transform_0, window_bounds = array<i64: 16, 128>}, {pipeline_mode = #tpu.pipeline_mode<synchronous>, transform_indices = @transform_1, window_bounds = array<i64: 128, 128>}, {pipeline_mode = #tpu.pipeline_mode<synchronous>, transform_indices = @transform_2, window_bounds = array<i64: 1, 128>}, {pipeline_mode = #tpu.pipeline_mode<synchronous>, transform_indices = @transform_3, window_bounds = array<i64: 128, 128>}, {pipeline_mode = #tpu.pipeline_mode<synchronous>, transform_indices = @transform_4, window_bounds = array<i64: 1, 128>}, {pipeline_mode = #tpu.pipeline_mode<synchronous>, transform_indices = @transform_5, window_bounds = array<i64: 128, 128>}, {pipeline_mode = #tpu.pipeline_mode<synchronous>, transform_indices = @transform_6, window_bounds = array<i64: 1, 128>}, {transform_indices = @transform_7, window_bounds = array<i64: 16, 128>}]} {
    %c0 = arith.constant 0 : index
    %c0_0 = arith.constant 0 : index
    %0 = vector.load %arg1[%c0, %c0_0] : memref<16x128xbf16, #tpu.memory_space<vmem>>, vector<16x128xbf16>
    %c0_1 = arith.constant 0 : index
    %c0_2 = arith.constant 0 : index
    %1 = vector.load %arg2[%c0_1, %c0_2] : memref<128x128xbf16, #tpu.memory_space<vmem>>, vector<128x128xbf16>
    %c0_3 = arith.constant 0 : index
    %c0_4 = arith.constant 0 : index
    %2 = vector.load %arg3[%c0_3, %c0_4] : memref<1x128xf32, #tpu.memory_space<vmem>>, vector<1x128xf32>
    %cst = arith.constant dense<0.000000e+00> : vector<16x128xf32>
    %3 = tpu.matmul %0, %1, %cst {dimension_numbers = #tpu.dot_dimension_numbers<[1], [0], [0], [1], [0, 0, 1, 1], [], []>} : vector<16x128xbf16>, vector<128x128xbf16>, vector<16x128xf32> -> vector<16x128xf32>
    %4 = vector.broadcast %2 : vector<1x128xf32> to vector<16x128xf32>
    %5 = arith.addf %3, %4 : vector<16x128xf32>
    %cst_5 = arith.constant 0.000000e+00 : f32
    %6 = vector.broadcast %cst_5 : f32 to vector<16x128xf32>
    %7 = arith.maximumf %5, %6 : vector<16x128xf32>
    %8 = arith.truncf %7 : vector<16x128xf32> to vector<16x128xbf16>
    %c0_6 = arith.constant 0 : index
    %c0_7 = arith.constant 0 : index
    %9 = vector.load %arg4[%c0_6, %c0_7] : memref<128x128xbf16, #tpu.memory_space<vmem>>, vector<128x128xbf16>
    %c0_8 = arith.constant 0 : index
    %c0_9 = arith.constant 0 : index
    %10 = vector.load %arg5[%c0_8, %c0_9] : memref<1x128xf32, #tpu.memory_space<vmem>>, vector<1x128xf32>
    %cst_10 = arith.constant dense<0.000000e+00> : vector<16x128xf32>
    %11 = tpu.matmul %8, %9, %cst_10 {dimension_numbers = #tpu.dot_dimension_numbers<[1], [0], [0], [1], [0, 0, 1, 1], [], []>} : vector<16x128xbf16>, vector<128x128xbf16>, vector<16x128xf32> -> vector<16x128xf32>
    %12 = vector.broadcast %10 : vector<1x128xf32> to vector<16x128xf32>
    %13 = arith.addf %11, %12 : vector<16x128xf32>
    %cst_11 = arith.constant 0.000000e+00 : f32
    %14 = vector.broadcast %cst_11 : f32 to vector<16x128xf32>
    %15 = arith.maximumf %13, %14 : vector<16x128xf32>
    %16 = arith.truncf %15 : vector<16x128xf32> to vector<16x128xbf16>
    %c0_12 = arith.constant 0 : index
    %c0_13 = arith.constant 0 : index
    %17 = vector.load %arg6[%c0_12, %c0_13] : memref<128x128xbf16, #tpu.memory_space<vmem>>, vector<128x128xbf16>
    %c0_14 = arith.constant 0 : index
    %c0_15 = arith.constant 0 : index
    %18 = vector.load %arg7[%c0_14, %c0_15] : memref<1x128xf32, #tpu.memory_space<vmem>>, vector<1x128xf32>
    %cst_16 = arith.constant dense<0.000000e+00> : vector<16x128xf32>
    %19 = tpu.matmul %16, %17, %cst_16 {dimension_numbers = #tpu.dot_dimension_numbers<[1], [0], [0], [1], [0, 0, 1, 1], [], []>} : vector<16x128xbf16>, vector<128x128xbf16>, vector<16x128xf32> -> vector<16x128xf32>
    %20 = vector.broadcast %18 : vector<1x128xf32> to vector<16x128xf32>
    %21 = arith.addf %19, %20 : vector<16x128xf32>
    %cst_17 = arith.constant dense<0xFF800000> : vector<16xf32>
    %22 = vector.multi_reduction <maximumf>, %21, %cst_17 [1] : vector<16x128xf32> to vector<16xf32>
    %23 = vector.shape_cast %22 : vector<16xf32> to vector<16x1xf32>
    %24 = vector.broadcast %23 : vector<16x1xf32> to vector<16x128xf32>
    %25 = arith.subf %21, %24 : vector<16x128xf32>
    %26 = math.exp %25 : vector<16x128xf32>
    %cst_18 = arith.constant dense<0.000000e+00> : vector<16xf32>
    %27 = vector.multi_reduction <add>, %26, %cst_18 [1] : vector<16x128xf32> to vector<16xf32>
    %28 = vector.shape_cast %27 : vector<16xf32> to vector<16x1xf32>
    %29 = math.log %28 : vector<16x1xf32>
    %30 = arith.addf %23, %29 : vector<16x1xf32>
    %31 = vector.broadcast %30 : vector<16x1xf32> to vector<16x128xf32>
    %32 = arith.subf %21, %31 : vector<16x128xf32>
    %c0_19 = arith.constant 0 : index
    %c0_20 = arith.constant 0 : index
    %33 = vector.load %arg8[%c0_19, %c0_20] : memref<16x128xf32, #tpu.memory_space<vmem>>, vector<16x128xf32>
    tpu.vector_store %arg8[%c0_19, %c0_20], %32 {strides = array<i32>} : memref<16x128xf32, #tpu.memory_space<vmem>>, vector<16x128xf32>,
    return
  }
  func.func @transform_0(%arg0: i32) -> (i32, i32) {
    %c0_i32 = arith.constant 0 : i32
    %c0_i32_0 = arith.constant 0 : i32
    return %arg0, %c0_i32 : i32, i32
  }
  func.func @transform_1(%arg0: i32) -> (i32, i32) {
    %c0_i32 = arith.constant 0 : i32
    %c0_i32_0 = arith.constant 0 : i32
    %c0_i32_1 = arith.constant 0 : i32
    return %c0_i32, %c0_i32_0 : i32, i32
  }
  func.func @transform_2(%arg0: i32) -> (i32, i32) {
    %c0_i32 = arith.constant 0 : i32
    %c0_i32_0 = arith.constant 0 : i32
    %c0_i32_1 = arith.constant 0 : i32
    return %c0_i32, %c0_i32_0 : i32, i32
  }
  func.func @transform_3(%arg0: i32) -> (i32, i32) {
    %c0_i32 = arith.constant 0 : i32
    %c0_i32_0 = arith.constant 0 : i32
    %c0_i32_1 = arith.constant 0 : i32
    return %c0_i32, %c0_i32_0 : i32, i32
  }
  func.func @transform_4(%arg0: i32) -> (i32, i32) {
    %c0_i32 = arith.constant 0 : i32
    %c0_i32_0 = arith.constant 0 : i32
    %c0_i32_1 = arith.constant 0 : i32
    return %c0_i32, %c0_i32_0 : i32, i32
  }
  func.func @transform_5(%arg0: i32) -> (i32, i32) {
    %c0_i32 = arith.constant 0 : i32
    %c0_i32_0 = arith.constant 0 : i32
    %c0_i32_1 = arith.constant 0 : i32
    return %c0_i32, %c0_i32_0 : i32, i32
  }
  func.func @transform_6(%arg0: i32) -> (i32, i32) {
    %c0_i32 = arith.constant 0 : i32
    %c0_i32_0 = arith.constant 0 : i32
    %c0_i32_1 = arith.constant 0 : i32
    return %c0_i32, %c0_i32_0 : i32, i32
  }
  func.func @transform_7(%arg0: i32) -> (i32, i32) {
    %c0_i32 = arith.constant 0 : i32
    %c0_i32_0 = arith.constant 0 : i32
    return %arg0, %c0_i32 : i32, i32
  }
}

module attributes {stable_mosaic.version = 11 : i64} {
  func.func @kernel(%arg0: i32, %arg1: memref<16x128xbf16, #tpu.memory_space<vmem>>, %arg2: memref<128x128xbf16, #tpu.memory_space<vmem>>, %arg3: memref<1x128xf32, #tpu.memory_space<vmem>>, %arg4: memref<128x128xbf16, #tpu.memory_space<vmem>>, %arg5: memref<1x128xf32, #tpu.memory_space<vmem>>, %arg6: memref<128x128xbf16, #tpu.memory_space<vmem>>, %arg7: memref<1x128xf32, #tpu.memory_space<vmem>>, %arg8: memref<16x128xf32, #tpu.memory_space<vmem>>) attributes {dimension_semantics = [#tpu.dimension_semantics<parallel>], iteration_bounds = array<i64: 1>, scalar_prefetch = 0 : i64, scratch_operands = 0 : i64, tpu.core_type = #tpu.core_type<tc>, window_params = [{transform_indices = @transform_0, window_bounds = array<i64: 16, 128>}, {pipeline_mode = #tpu.pipeline_mode<synchronous>, transform_indices = @transform_1, window_bounds = array<i64: 128, 128>}, {pipeline_mode = #tpu.pipeline_mode<synchronous>, transform_indices = @transform_2, window_bounds = array<i64: 1, 128>}, {pipeline_mode = #tpu.pipeline_mode<synchronous>, transform_indices = @transform_3, window_bounds = array<i64: 128, 128>}, {pipeline_mode = #tpu.pipeline_mode<synchronous>, transform_indices = @transform_4, window_bounds = array<i64: 1, 128>}, {pipeline_mode = #tpu.pipeline_mode<synchronous>, transform_indices = @transform_5, window_bounds = array<i64: 128, 128>}, {pipeline_mode = #tpu.pipeline_mode<synchronous>, transform_indices = @transform_6, window_bounds = array<i64: 1, 128>}, {transform_indices = @transform_7, window_bounds = array<i64: 16, 128>}]} {
    %c0 = arith.constant 0 : index
    %c0_0 = arith.constant 0 : index
    %0 = vector.load %arg1[%c0, %c0_0] : memref<16x128xbf16, #tpu.memory_space<vmem>>, vector<16x128xbf16>
    %c0_1 = arith.constant 0 : index
    %c0_2 = arith.constant 0 : index
    %1 = vector.load %arg2[%c0_1, %c0_2] : memref<128x128xbf16, #tpu.memory_space<vmem>>, vector<128x128xbf16>
    %c0_3 = arith.constant 0 : index
    %c0_4 = arith.constant 0 : index
    %2 = vector.load %arg3[%c0_3, %c0_4] : memref<1x128xf32, #tpu.memory_space<vmem>>, vector<1x128xf32>
    %cst = arith.constant dense<0.000000e+00> : vector<16x128xf32>
    %3 = tpu.matmul %0, %1, %cst {dimension_numbers = #tpu.dot_dimension_numbers<[1], [0], [0], [1], [0, 0, 1, 1], [], []>} : vector<16x128xbf16>, vector<128x128xbf16>, vector<16x128xf32> -> vector<16x128xf32>
    %4 = vector.broadcast %2 : vector<1x128xf32> to vector<16x128xf32>
    %5 = arith.addf %3, %4 : vector<16x128xf32>
    %cst_5 = arith.constant 0.000000e+00 : f32
    %6 = vector.broadcast %cst_5 : f32 to vector<16x128xf32>
    %7 = arith.maximumf %5, %6 : vector<16x128xf32>
    %8 = arith.truncf %7 : vector<16x128xf32> to vector<16x128xbf16>
    %c0_6 = arith.constant 0 : index
    %c0_7 = arith.constant 0 : index
    %9 = vector.load %arg4[%c0_6, %c0_7] : memref<128x128xbf16, #tpu.memory_space<vmem>>, vector<128x128xbf16>
    %c0_8 = arith.constant 0 : index
    %c0_9 = arith.constant 0 : index
    %10 = vector.load %arg5[%c0_8, %c0_9] : memref<1x128xf32, #tpu.memory_space<vmem>>, vector<1x128xf32>
    %cst_10 = arith.constant dense<0.000000e+00> : vector<16x128xf32>
    %11 = tpu.matmul %8, %9, %cst_10 {dimension_numbers = #tpu.dot_dimension_numbers<[1], [0], [0], [1], [0, 0, 1, 1], [], []>} : vector<16x128xbf16>, vector<128x128xbf16>, vector<16x128xf32> -> vector<16x128xf32>
    %12 = vector.broadcast %10 : vector<1x128xf32> to vector<16x128xf32>
    %13 = arith.addf %11, %12 : vector<16x128xf32>
    %cst_11 = arith.constant 0.000000e+00 : f32
    %14 = vector.broadcast %cst_11 : f32 to vector<16x128xf32>
    %15 = arith.maximumf %13, %14 : vector<16x128xf32>
    %16 = arith.truncf %15 : vector<16x128xf32> to vector<16x128xbf16>
    %c0_12 = arith.constant 0 : index
    %c0_13 = arith.constant 0 : index
    %17 = vector.load %arg6[%c0_12, %c0_13] : memref<128x128xbf16, #tpu.memory_space<vmem>>, vector<128x128xbf16>
    %c0_14 = arith.constant 0 : index
    %c0_15 = arith.constant 0 : index
    %18 = vector.load %arg7[%c0_14, %c0_15] : memref<1x128xf32, #tpu.memory_space<vmem>>, vector<1x128xf32>
    %cst_16 = arith.constant dense<0.000000e+00> : vector<16x128xf32>
    %19 = tpu.matmul %16, %17, %cst_16 {dimension_numbers = #tpu.dot_dimension_numbers<[1], [0], [0], [1], [0, 0, 1, 1], [], []>} : vector<16x128xbf16>, vector<128x128xbf16>, vector<16x128xf32> -> vector<16x128xf32>
    %20 = vector.broadcast %18 : vector<1x128xf32> to vector<16x128xf32>
    %21 = arith.addf %19, %20 : vector<16x128xf32>
    %cst_17 = arith.constant dense<0xFF800000> : vector<16xf32>
    %22 = vector.multi_reduction <maximumf>, %21, %cst_17 [1] : vector<16x128xf32> to vector<16xf32>
    %23 = vector.shape_cast %22 : vector<16xf32> to vector<16x1xf32>
    %24 = vector.broadcast %23 : vector<16x1xf32> to vector<16x128xf32>
    %25 = arith.subf %21, %24 : vector<16x128xf32>
    %26 = math.exp %25 : vector<16x128xf32>
    %cst_18 = arith.constant dense<0.000000e+00> : vector<16xf32>
    %27 = vector.multi_reduction <add>, %26, %cst_18 [1] : vector<16x128xf32> to vector<16xf32>
    %28 = vector.shape_cast %27 : vector<16xf32> to vector<16x1xf32>
    %29 = math.log %28 : vector<16x1xf32>
    %30 = arith.addf %23, %29 : vector<16x1xf32>
    %31 = vector.broadcast %30 : vector<16x1xf32> to vector<16x128xf32>
    %32 = arith.subf %21, %31 : vector<16x128xf32>
    %c0_19 = arith.constant 0 : index
    %c0_20 = arith.constant 0 : index
    %33 = vector.load %arg8[%c0_19, %c0_20] : memref<16x128xf32, #tpu.memory_space<vmem>>, vector<16x128xf32>
    tpu.vector_store %arg8[%c0_19, %c0_20], %32 {strides = array<i32>} : memref<16x128xf32, #tpu.memory_space<vmem>>, vector<16x128xf32>,
    return
  }
  func.func @transform_0(%arg0: i32) -> (i32, i32) {
    %c0_i32 = arith.constant 0 : i32
    %c0_i32_0 = arith.constant 0 : i32
    return %arg0, %c0_i32 : i32, i32
  }
  func.func @transform_1(%arg0: i32) -> (i32, i32) {
    %c0_i32 = arith.constant 0 : i32
    %c0_i32_0 = arith.constant 0 : i32
    %c0_i32_1 = arith.constant 0 : i32
    return %c0_i32, %c0_i32_0 : i32, i32
  }
  func.func @transform_2(%arg0: i32) -> (i32, i32) {
    %c0_i32 = arith.constant 0 : i32
    %c0_i32_0 = arith.constant 0 : i32
    %c0_i32_1 = arith.constant 0 : i32
    return %c0_i32, %c0_i32_0 : i32, i32
  }
  func.func @transform_3(%arg0: i32) -> (i32, i32) {
    %c0_i32 = arith.constant 0 : i32
    %c0_i32_0 = arith.constant 0 : i32
    %c0_i32_1 = arith.constant 0 : i32
    return %c0_i32, %c0_i32_0 : i32, i32
  }
  func.func @transform_4(%arg0: i32) -> (i32, i32) {
    %c0_i32 = arith.constant 0 : i32
    %c0_i32_0 = arith.constant 0 : i32
    %c0_i32_1 = arith.constant 0 : i32
    return %c0_i32, %c0_i32_0 : i32, i32
  }
  func.func @transform_5(%arg0: i32) -> (i32, i32) {
    %c0_i32 = arith.constant 0 : i32
    %c0_i32_0 = arith.constant 0 : i32
    %c0_i32_1 = arith.constant 0 : i32
    return %c0_i32, %c0_i32_0 : i32, i32
  }
  func.func @transform_6(%arg0: i32) -> (i32, i32) {
    %c0_i32 = arith.constant 0 : i32
    %c0_i32_0 = arith.constant 0 : i32
    %c0_i32_1 = arith.constant 0 : i32
    return %c0_i32, %c0_i32_0 : i32, i32
  }
  func.func @transform_7(%arg0: i32) -> (i32, i32) {
    %c0_i32 = arith.constant 0 : i32
    %c0_i32_0 = arith.constant 0 : i32
    return %arg0, %c0_i32 : i32, i32
  }
}

</mosaic_0001>

<bundles_post_ra>
// kernel: tpu_custom_call.1
= control target key start
LH: loop header
LB: loop body
LE: loop exit
PB: predicated region body
PF: predicated region fallthrough
CT: control target
= control target key end

     0   :  { %12 = vsyncpa [#allocation3], 0  ;;  %s929_s0 = inlined_call_operand.hbm [shape: bf16[16,128], index: 0, kind: input, shape index: {}]   ;;  %s930_s1 = inlined_call_operand.hbm [shape: bf16[128,128], index: 1, kind: input, shape index: {}]   ;;  %s931_s2 = inlined_call_operand.vmem [shape: f32[1,128], index: 2, kind: input, shape index: {}]   ;;  %s932_s3 = inlined_call_operand.hbm [shape: bf16[128,128], index: 3, kind: input, shape index: {}]   ;;  %s933_s4 = inlined_call_operand.vmem [shape: f32[1,128], index: 4, kind: input, shape index: {}]   ;;  %s934_s5 = inlined_call_operand.hbm [shape: bf16[128,128], index: 5, kind: input, shape index: {}]   ;;  %s935_s6 = inlined_call_operand.vmem [shape: f32[1,128], index: 6, kind: input, shape index: {}]   ;;  %s936_s7 = inlined_call_operand.hbm [shape: f32[16,128], index: 7, kind: output, shape index: {}]  }
   0x1   :  { %13 = vsyncpa [#allocation6], 0 }
   0x2   :  { %14 = vsyncpa [#allocation9], 0 }
   0x3   :  { %15 = vsyncpa [#allocation4], 0  ;;  %s753_s24 = smov [#allocation5]   ;;  %s754_s26 = smov [#allocation2]  }
   0x4   :  { %s33_s25 = sshll.u32 %s753_s24, 4  ;;  %s21_s27 = sshll.u32 %s754_s26, 4  ;;  %s34_s25 = int_to_ptr.vmem [resolvable:$true] %s33_s25  ;;  %s804_s27 = int_to_ptr.vmem [resolvable:$true] %s21_s27 }
   0x5   :  { %s635_s30 = scalar_lea.hbm %s930_s1, 1024 }
   0x6   :  { %p636_p0 = scmp.ne.s32.totalorder %s930_s1, %s635_s30  ;;  %p639_p1 = scmp.lt.u32.totalorder %s635_s30, %s930_s1 }
   0x8   :  { %p641_p2 = pnand %p639_p1, %p636_p0 }
   0xa   :  { %644 = shalt.err (!%p641_p2)
}
   0xb   :  { %s645_s12 = scalar_lea.vmem %s34_s25, 1024  ;;  %p650_p4 = scmp.lt.s32.totalorder %s34_s25, %s34_s25 }
   0xc   :  { %p646_p3 = scmp.ne.s32.totalorder %s34_s25, %s645_s12  ;;  %p651_p5 = scmp.lt.s32.totalorder %s645_s12, %s645_s12 }
   0xe   :  { %p652_p6 = por %p651_p5, %p650_p4 }
  0x10   :  { %p653_p7 = pnand %p652_p6, %p646_p3 }
  0x12   :  { %656 = shalt.err (!%p653_p7)
}
  0x13   :  { %s755_s13 = smov 64   ;;  %s756_s14 = smov 4  }
  0x14   :  { %39 = dma.hbm_to_vmem [thread:$0]  %s930_s1, 1024, %s34_s25, [#allocation6], %s755_s13, %s755_s13, %s756_s14  }
  0x15   :  { %s657_s19 = scalar_lea.hbm %s929_s0, 128 }
  0x16   :  { %p658_p8 = scmp.ne.s32.totalorder %s929_s0, %s657_s19  ;;  %p661_p9 = scmp.lt.u32.totalorder %s657_s19, %s929_s0 }
  0x18   :  { %p663_p10 = pnand %p661_p9, %p658_p8 }
  0x1a   :  { %666 = shalt.err (!%p663_p10)
}
  0x1b   :  { %s667_s24 = scalar_lea.vmem %s804_s27, 128  ;;  %p672_p12 = scmp.lt.s32.totalorder %s804_s27, %s804_s27 }
  0x1c   :  { %p668_p11 = scmp.ne.s32.totalorder %s804_s27, %s667_s24  ;;  %p673_p13 = scmp.lt.s32.totalorder %s667_s24, %s667_s24 }
  0x1e   :  { %p674_p0 = por %p673_p13, %p672_p12 }
  0x20   :  { %p675_p1 = pnand %p674_p0, %p668_p11 }
  0x22   :  { %678 = shalt.err (!%p675_p1)
}
  0x23   :  { %27 = dma.hbm_to_vmem [thread:$0]  %s929_s0, 128, %s804_s27, [#allocation3], %s755_s13, %s755_s13, %s756_s14  }
  0x24   :  { %s757_s26 = smov [#allocation7]   ;;  %s758_s29 = smov [#allocation8]  }
  0x25   :  { %s47_s28 = sshll.u32 %s757_s26, 4  ;;  %s61_s30 = sshll.u32 %s758_s29, 4  ;;  %s48_s28 = int_to_ptr.vmem [resolvable:$true] %s47_s28  ;;  %s841_s30 = int_to_ptr.vmem [resolvable:$true] %s61_s30 }
  0x26   :  { %s679_s10 = scalar_lea.hbm %s932_s3, 1024 }
  0x27   :  { %p680_p2 = scmp.ne.s32.totalorder %s932_s3, %s679_s10  ;;  %p683_p3 = scmp.lt.u32.totalorder %s679_s10, %s932_s3 }
  0x29   :  { %p685_p4 = pnand %p683_p3, %p680_p2 }
  0x2b   :  { %688 = shalt.err (!%p685_p4)
}
  0x2c   :  { %s689_s0 = scalar_lea.vmem %s48_s28, 1024  ;;  %p694_p6 = scmp.lt.s32.totalorder %s48_s28, %s48_s28 }
  0x2d   :  { %p690_p5 = scmp.ne.s32.totalorder %s48_s28, %s689_s0  ;;  %p695_p7 = scmp.lt.s32.totalorder %s689_s0, %s689_s0 }
  0x2f   :  { %p696_p8 = por %p695_p7, %p694_p6 }
  0x31   :  { %p697_p9 = pnand %p696_p8, %p690_p5 }
  0x33   :  { %700 = shalt.err (!%p697_p9)
}
  0x34   :  { %53 = dma.hbm_to_vmem [thread:$0]  %s932_s3, 1024, %s48_s28, [#allocation6], %s755_s13, %s755_s13, %s756_s14  }
  0x35   :  { %s701_s20 = scalar_lea.hbm %s934_s5, 1024 }
  0x36   :  { %p702_p10 = scmp.ne.s32.totalorder %s934_s5, %s701_s20  ;;  %p705_p11 = scmp.lt.u32.totalorder %s701_s20, %s934_s5 }
  0x38   :  { %p707_p12 = pnand %p705_p11, %p702_p10 }
  0x3a   :  { %710 = shalt.err (!%p707_p12)
}
  0x3b   :  { %s711_s1 = scalar_lea.vmem %s841_s30, 1024  ;;  %p716_p0 = scmp.lt.s32.totalorder %s841_s30, %s841_s30 }
  0x3c   :  { %p712_p13 = scmp.ne.s32.totalorder %s841_s30, %s711_s1  ;;  %p717_p1 = scmp.lt.s32.totalorder %s711_s1, %s711_s1 }
  0x3e   :  { %p718_p2 = por %p717_p1, %p716_p0 }
  0x40   :  { %p719_p3 = pnand %p718_p2, %p712_p13 }
  0x42   :  { %722 = shalt.err (!%p719_p3)
}
  0x43   :  { %67 = dma.hbm_to_vmem [thread:$0]  %s934_s5, 1024, %s841_s30, [#allocation9], %s755_s13, %s755_s13, %s756_s14  }
  0x44   :  { %745 = dma.done.wait [#allocation3], 128  }
  0x45   :  { %746 = vsyncadd [#allocation3], 4294967168 }
  0x46   :  { %747 = dma.done.wait [#allocation6], 2048  }
  0x47   :  { %748 = vsyncadd [#allocation6], 4294965248 }
  0x48   :  { %749 = dma.done.wait [#allocation9], 1024  }
  0x49   :  { %750 = vsyncadd [#allocation9], 4294966272  ;;  %v759_v0 = vmov 0.0   ;;  %vm760_vm0 = vmmov 0   ;;  %v602_v1 = vld [vmem:[#allocation5] sm:$0xff]   ;;  %v603_v2 = vld [vmem:[#allocation5 + $0x8] sm:$0xff]  }
  0x4a   :  { %531 = vmatprep.subr.bf16.mxu0 %v759_v0  ;;  %547 = vmatprep.mubr.msk.bf16.mxu0 %vm760_vm0, %v759_v0  ;;  %v604_v3 = vld [vmem:[#allocation5 + $0x10] sm:$0xff]   ;;  %v611_v4 = vld [vmem:[#allocation7] sm:$0xff]   ;;  %v605_v5 = vld [vmem:[#allocation5 + $0x18] sm:$0xff]  }
  0x4b   :  { %551 = vmatprep.subr.bf16.mxu1 %v759_v0  ;;  %567 = vmatprep.mubr.msk.bf16.mxu1 %vm760_vm0, %v759_v0  ;;  %v612_v6 = vld [vmem:[#allocation7 + $0x8] sm:$0xff]   ;;  %v606_v7 = vld [vmem:[#allocation5 + $0x20] sm:$0xff]   ;;  %v613_v8 = vld [vmem:[#allocation7 + $0x10] sm:$0xff]  }
  0x4c   :  { %532 = vmatpush3.bf16.msra.mxu0 %v602_v1  ;;  %552 = vmatpush3.bf16.msra.mxu1 %v611_v4  ;;  %v607_v9 = vld [vmem:[#allocation5 + $0x28] sm:$0xff]   ;;  %v614_v10 = vld [vmem:[#allocation7 + $0x18] sm:$0xff]   ;;  %v608_v11 = vld [vmem:[#allocation5 + $0x30] sm:$0xff]  }
  0x4d   :  { %533 = vmatprep.subr.bf16.mxu0 %v759_v0  ;;  %553 = vmatprep.subr.bf16.mxu1 %v759_v0  ;;  %v615_v12 = vld [vmem:[#allocation7 + $0x20] sm:$0xff]   ;;  %v609_v13 = vld [vmem:[#allocation5 + $0x38] sm:$0xff]   ;;  %v616_v14 = vld [vmem:[#allocation7 + $0x28] sm:$0xff]  }
  0x4e   :  { %v610_v15 = vld [vmem:[#allocation2] sm:$0xff]   ;;  %v617_v16 = vld [vmem:[#allocation7 + $0x30] sm:$0xff]   ;;  %v619_v18 = vld [vmem:[#allocation8] sm:$0xff]  }
  0x4f   :  { %v618_v17 = vld [vmem:[#allocation7 + $0x38] sm:$0xff]   ;;  %v620_v19 = vld [vmem:[#allocation8 + $0x8] sm:$0xff]   ;;  %v621_v20 = vld [vmem:[#allocation8 + $0x10] sm:$0xff]  }
  0x50   :  { %534 = vmatpush3.bf16.msra.mxu0 %v603_v2  ;;  %554 = vmatpush3.bf16.msra.mxu1 %v612_v6  ;;  %v622_v21 = vld [vmem:[#allocation8 + $0x18] sm:$0xff]   ;;  %v623_v22 = vld [vmem:[#allocation8 + $0x20] sm:$0xff]   ;;  %v624_v23 = vld [vmem:[#allocation8 + $0x28] sm:$0xff]  }
  0x51   :  { %535 = vmatprep.subr.bf16.mxu0 %v759_v0  ;;  %555 = vmatprep.subr.bf16.mxu1 %v759_v0  ;;  %v476_v24 = vld [vmem:[%s931_s2] ss:$0 sm:$0xff]  ;;  %v625_v34 = vld [vmem:[#allocation8 + $0x30] sm:$0xff]  }
  0x52   :  { %v626_v35 = vld [vmem:[#allocation8 + $0x38] sm:$0xff]  }
  0x53   :  { %v486_v36 = vld [vmem:[%s933_s4] ss:$0 sm:$0xff]  ;;  %s761_s4 = smov [#allocation10]  }
  0x54   :  { %536 = vmatpush3.bf16.msra.mxu0 %v604_v3  ;;  %556 = vmatpush3.bf16.msra.mxu1 %v613_v8  ;;  %v495_v46 = vld [vmem:[%s935_s6] ss:$0 sm:$0xff]  ;;  %s462_s6 = sshll.u32 %s761_s4, 4  ;;  %s463_s6 = int_to_ptr.vmem [resolvable:$true] %s462_s6 }
  0x55   :  { %537 = vmatprep.subr.bf16.mxu0 %v759_v0  ;;  %557 = vmatprep.subr.bf16.mxu1 %v759_v0  ;;  %s723_s29 = scalar_lea.vmem %s463_s6, 256  ;;  %p728_p5 = scmp.lt.s32.totalorder %s463_s6, %s463_s6 }
  0x56   :  { %p724_p4 = scmp.ne.s32.totalorder %s463_s6, %s723_s29  ;;  %p729_p6 = scmp.lt.s32.totalorder %s723_s29, %s723_s29 }
  0x58   :  { %538 = vmatpush3.bf16.msra.mxu0 %v605_v5  ;;  %558 = vmatpush3.bf16.msra.mxu1 %v614_v10  ;;  %p730_p7 = por %p729_p6, %p728_p5 }
  0x59   :  { %539 = vmatprep.subr.bf16.mxu0 %v759_v0  ;;  %559 = vmatprep.subr.bf16.mxu1 %v759_v0 }
  0x5a   :  { %p731_p8 = pnand %p730_p7, %p724_p4 }
  0x5c   :  { %540 = vmatpush3.bf16.msra.mxu0 %v606_v7  ;;  %560 = vmatpush3.bf16.msra.mxu1 %v615_v12 }
  0x5d   :  { %541 = vmatprep.subr.bf16.mxu0 %v759_v0  ;;  %561 = vmatprep.subr.bf16.mxu1 %v759_v0 }
  0x60   :  { %542 = vmatpush3.bf16.msra.mxu0 %v607_v9  ;;  %562 = vmatpush3.bf16.msra.mxu1 %v616_v14 }
  0x61   :  { %543 = vmatprep.subr.bf16.mxu0 %v759_v0  ;;  %563 = vmatprep.subr.bf16.mxu1 %v759_v0 }
  0x64   :  { %544 = vmatpush3.bf16.msra.mxu0 %v608_v11  ;;  %564 = vmatpush3.bf16.msra.mxu1 %v617_v16 }
  0x65   :  { %545 = vmatprep.subr.bf16.mxu0 %v759_v0  ;;  %565 = vmatprep.subr.bf16.mxu1 %v759_v0 }
  0x68   :  { %546 = vmatpush3.bf16.msra.mxu0 %v609_v13  ;;  %566 = vmatpush3.bf16.msra.mxu1 %v618_v17 }
  0x69   :  { %571 = vmatprep.subr.bf16.mxu0 %v759_v0 }
  0x6b   :  { %548 = vmatmul.mubr.bf16.vlgmr.msra.gmra.mrb[0].mxu0 %v610_v15 }
  0x6c   :  { %587 = vmatprep.mubr.msk.bf16.mxu0 %vm760_vm0, %v759_v0  ;;  %572 = vmatpush3.bf16.msra.mxu0 %v619_v18 }
  0x6d   :  { %573 = vmatprep.subr.bf16.mxu0 %v759_v0 }
  0x70   :  { %574 = vmatpush3.bf16.msra.mxu0 %v620_v19 }
  0x71   :  { %575 = vmatprep.subr.bf16.mxu0 %v759_v0 }
  0x74   :  { %576 = vmatpush3.bf16.msra.mxu0 %v621_v20 }
  0x75   :  { %577 = vmatprep.subr.bf16.mxu0 %v759_v0 }
  0x78   :  { %578 = vmatpush3.bf16.msra.mxu0 %v622_v21 }
  0x79   :  { %579 = vmatprep.subr.bf16.mxu0 %v759_v0 }
  0x7c   :  { %580 = vmatpush3.bf16.msra.mxu0 %v623_v22 }
  0x7d   :  { %581 = vmatprep.subr.bf16.mxu0 %v759_v0 }
  0x80   :  { %582 = vmatpush3.bf16.msra.mxu0 %v624_v23 }
  0x81   :  { %583 = vmatprep.subr.bf16.mxu0 %v759_v0 }
  0x84   :  { %584 = vmatpush3.bf16.msra.mxu0 %v625_v34 }
  0x85   :  { %585 = vmatprep.subr.bf16.mxu0 %v759_v0 }
  0x88   :  { %586 = vmatpush3.bf16.msra.mxu0 %v626_v35 }
 0x13e   :  { %v196_v25 = vpop.f32.mrb[0].mxu0 }
 0x13f   :  { %v197_v26 = vadd.f32 %v476_v24, %v196_v25  ;;  %v549_v27 = vpop.f32.mrb[1].mxu0 }
 0x140   :  { %v199_v28 = vpop.f32.mrb[2].mxu0 }
 0x141   :  { %v200_v29 = vadd.f32 %v476_v24, %v199_v28  ;;  %v550_v30 = vpop.f32.mrb[3].mxu0  ;;  %v203_v31 = vmax.f32 %v197_v26, 0.0 }
 0x143   :  { %v204_v32 = vmax.f32 %v200_v29, 0.0 }
 0x145   :  { %v205_v33 = vpack.c.bf16 %v204_v32, %v203_v31 }
 0x147   :  { %568 = vmatmul.mubr.bf16.vlgmr.msra.gmra.mrb[0].mxu1 %v205_v33 }
 0x21a   :  { %v311_v37 = vpop.f32.mrb[0].mxu1 }
 0x21b   :  { %v312_v38 = vadd.f32 %v486_v36, %v311_v37  ;;  %v569_v39 = vpop.f32.mrb[1].mxu1 }
 0x21c   :  { %v314_v40 = vpop.f32.mrb[2].mxu1 }
 0x21d   :  { %v315_v41 = vadd.f32 %v486_v36, %v314_v40  ;;  %v570_v42 = vpop.f32.mrb[3].mxu1  ;;  %v318_v43 = vmax.f32 %v312_v38, 0.0 }
 0x21f   :  { %v319_v44 = vmax.f32 %v315_v41, 0.0 }
 0x221   :  { %v320_v45 = vpack.c.bf16 %v319_v44, %v318_v43 }
 0x223   :  { %588 = vmatmul.mubr.bf16.vlgmr.msra.gmra.mrb[4].mxu0 %v320_v45 }
 0x2f6   :  { %v426_v47 = vpop.f32.mrb[4].mxu0 }
 0x2f7   :  { %v427_v48 = vadd.f32 %v495_v46, %v426_v47  ;;  %v589_v49 = vpop.f32.mrb[5].mxu0 }
 0x2f8   :  { %v429_v50 = vpop.f32.mrb[6].mxu0 }
 0x2f9   :  { %433 = vmax.xlane.f32.xlu0 %v427_v48  ;;  %v590_v51 = vpop.f32.mrb[7].mxu0  ;;  %v430_v52 = vadd.f32 %v495_v46, %v429_v50 }
 0x2fd   :  { %435 = vmax.xlane.f32.xlu0 %v430_v52 }
 0x386   :  { %v434_v53 = vpop.xlane.xlu0 %433 }
 0x387   :  { %v437_v54 = vsub.f32 %v427_v48, %v434_v53 }
 0x389   :  { %v439_v55 = vmul.f32 1.442695, %v437_v54 }
 0x38a   :  { %v436_v56 = vpop.xlane.xlu0 %435 }
 0x38b   :  { %v438_v57 = vsub.f32 %v430_v52, %v436_v56  ;;  %627 = vpow2.f32 %v439_v55 }
 0x38d   :  { %v441_v58 = vmul.f32 1.442695, %v438_v57 }
 0x38f   :  { %629 = vpow2.f32 %v441_v58 }
 0x395   :  { %v628_v59 = vpop.eup %627 }
 0x396   :  { %443 = vadd.xlane.f32.xlu1 %v628_v59 }
 0x399   :  { %v630_v60 = vpop.eup %629 }
 0x39a   :  { %445 = vadd.xlane.f32.xlu1 %v630_v60 }
 0x423   :  { %v444_v61 = vpop.xlane.xlu1 %443 }
 0x424   :  { %631 = vlog2.f32 %v444_v61 }
 0x427   :  { %v446_v62 = vpop.xlane.xlu1 %445 }
 0x428   :  { %633 = vlog2.f32 %v446_v62 }
 0x42e   :  { %v632_v63 = vpop.eup %631 }
 0x42f   :  { %v448_v0 = vmul.f32 0.6931472, %v632_v63 }
 0x431   :  { %v451_v1 = vadd.f32 %v448_v0, %v434_v53 }
 0x432   :  { %v634_v2 = vpop.eup %633 }
 0x433   :  { %v453_v3 = vsub.f32 %v427_v48, %v451_v1  ;;  %v450_v4 = vmul.f32 0.6931472, %v634_v2 }
 0x435   :  { %455 = vst [vmem:[#allocation10] sm:$0xff] %v453_v3  ;;  %v452_v5 = vadd.f32 %v450_v4, %v436_v56 }
 0x437   :  { %v454_v6 = vsub.f32 %v430_v52, %v452_v5 }
 0x439   :  { %456 = vst [vmem:[#allocation10 + $0x8] sm:$0xff] %v454_v6 }
 0x43a   :  { %734 = shalt.err (!%p731_p8)
}
 0x43b   :  { %s735_s9 = scalar_lea.hbm %s936_s7, 256 }
 0x43c   :  { %p736_p9 = scmp.ne.s32.totalorder %s936_s7, %s735_s9  ;;  %p739_p10 = scmp.lt.u32.totalorder %s735_s9, %s936_s7 }
 0x43e   :  { %p741_p11 = pnand %p739_p10, %p736_p9 }
 0x440   :  { %744 = shalt.err (!%p741_p11)
}
 0x441   :  { %s762_s16 = smov 128   ;;  %s763_s0 = smov 8  }
 0x442   :  { %468 = dma.vmem_to_hbm [thread:$0]  %s463_s6, 256, %s936_s7, [#allocation4], %s762_s16, %s762_s16, %s763_s0  }
 0x443   :  { %751 = dma.done.wait [#allocation4], 256  }
 0x444   :  { %752 = vsyncadd [#allocation4], 4294967040 }
 0x445   :  { %472 = vsyncpa [#allocation3], 1 }
 0x446   :  { %473 = vsyncpa [#allocation6], 1 }
 0x447   :  { %474 = vsyncpa [#allocation9], 1 }
 0x448   :  { %475 = vsyncpa [#allocation4], 1 }

// kernel: tpu_custom_call.1
= control target key start
LH: loop header
LB: loop body
LE: loop exit
PB: predicated region body
PF: predicated region fallthrough
CT: control target
= control target key end

     0   :  { %12 = vsyncpa [#allocation3], 0  ;;  %s929_s0 = inlined_call_operand.hbm [shape: bf16[16,128], index: 0, kind: input, shape index: {}]   ;;  %s930_s1 = inlined_call_operand.hbm [shape: bf16[128,128], index: 1, kind: input, shape index: {}]   ;;  %s931_s2 = inlined_call_operand.vmem [shape: f32[1,128], index: 2, kind: input, shape index: {}]   ;;  %s932_s3 = inlined_call_operand.hbm [shape: bf16[128,128], index: 3, kind: input, shape index: {}]   ;;  %s933_s4 = inlined_call_operand.vmem [shape: f32[1,128], index: 4, kind: input, shape index: {}]   ;;  %s934_s5 = inlined_call_operand.hbm [shape: bf16[128,128], index: 5, kind: input, shape index: {}]   ;;  %s935_s6 = inlined_call_operand.vmem [shape: f32[1,128], index: 6, kind: input, shape index: {}]   ;;  %s936_s7 = inlined_call_operand.hbm [shape: f32[16,128], index: 7, kind: output, shape index: {}]  }
   0x1   :  { %13 = vsyncpa [#allocation6], 0 }
   0x2   :  { %14 = vsyncpa [#allocation9], 0 }
   0x3   :  { %15 = vsyncpa [#allocation4], 0  ;;  %s753_s24 = smov [#allocation5]   ;;  %s754_s26 = smov [#allocation2]  }
   0x4   :  { %s33_s25 = sshll.u32 %s753_s24, 4  ;;  %s21_s27 = sshll.u32 %s754_s26, 4  ;;  %s34_s25 = int_to_ptr.vmem [resolvable:$true] %s33_s25  ;;  %s804_s27 = int_to_ptr.vmem [resolvable:$true] %s21_s27 }
   0x5   :  { %s635_s30 = scalar_lea.hbm %s930_s1, 1024 }
   0x6   :  { %p636_p0 = scmp.ne.s32.totalorder %s930_s1, %s635_s30  ;;  %p639_p1 = scmp.lt.u32.totalorder %s635_s30, %s930_s1 }
   0x8   :  { %p641_p2 = pnand %p639_p1, %p636_p0 }
   0xa   :  { %644 = shalt.err (!%p641_p2)
}
   0xb   :  { %s645_s12 = scalar_lea.vmem %s34_s25, 1024  ;;  %p650_p4 = scmp.lt.s32.totalorder %s34_s25, %s34_s25 }
   0xc   :  { %p646_p3 = scmp.ne.s32.totalorder %s34_s25, %s645_s12  ;;  %p651_p5 = scmp.lt.s32.totalorder %s645_s12, %s645_s12 }
   0xe   :  { %p652_p6 = por %p651_p5, %p650_p4 }
  0x10   :  { %p653_p7 = pnand %p652_p6, %p646_p3 }
  0x12   :  { %656 = shalt.err (!%p653_p7)
}
  0x13   :  { %s755_s13 = smov 64   ;;  %s756_s14 = smov 4  }
  0x14   :  { %39 = dma.hbm_to_vmem [thread:$0]  %s930_s1, 1024, %s34_s25, [#allocation6], %s755_s13, %s755_s13, %s756_s14  }
  0x15   :  { %s657_s19 = scalar_lea.hbm %s929_s0, 128 }
  0x16   :  { %p658_p8 = scmp.ne.s32.totalorder %s929_s0, %s657_s19  ;;  %p661_p9 = scmp.lt.u32.totalorder %s657_s19, %s929_s0 }
  0x18   :  { %p663_p10 = pnand %p661_p9, %p658_p8 }
  0x1a   :  { %666 = shalt.err (!%p663_p10)
}
  0x1b   :  { %s667_s24 = scalar_lea.vmem %s804_s27, 128  ;;  %p672_p12 = scmp.lt.s32.totalorder %s804_s27, %s804_s27 }
  0x1c   :  { %p668_p11 = scmp.ne.s32.totalorder %s804_s27, %s667_s24  ;;  %p673_p13 = scmp.lt.s32.totalorder %s667_s24, %s667_s24 }
  0x1e   :  { %p674_p0 = por %p673_p13, %p672_p12 }
  0x20   :  { %p675_p1 = pnand %p674_p0, %p668_p11 }
  0x22   :  { %678 = shalt.err (!%p675_p1)
}
  0x23   :  { %27 = dma.hbm_to_vmem [thread:$0]  %s929_s0, 128, %s804_s27, [#allocation3], %s755_s13, %s755_s13, %s756_s14  }
  0x24   :  { %s757_s26 = smov [#allocation7]   ;;  %s758_s29 = smov [#allocation8]  }
  0x25   :  { %s47_s28 = sshll.u32 %s757_s26, 4  ;;  %s61_s30 = sshll.u32 %s758_s29, 4  ;;  %s48_s28 = int_to_ptr.vmem [resolvable:$true] %s47_s28  ;;  %s841_s30 = int_to_ptr.vmem [resolvable:$true] %s61_s30 }
  0x26   :  { %s679_s10 = scalar_lea.hbm %s932_s3, 1024 }
  0x27   :  { %p680_p2 = scmp.ne.s32.totalorder %s932_s3, %s679_s10  ;;  %p683_p3 = scmp.lt.u32.totalorder %s679_s10, %s932_s3 }
  0x29   :  { %p685_p4 = pnand %p683_p3, %p680_p2 }
  0x2b   :  { %688 = shalt.err (!%p685_p4)
}
  0x2c   :  { %s689_s0 = scalar_lea.vmem %s48_s28, 1024  ;;  %p694_p6 = scmp.lt.s32.totalorder %s48_s28, %s48_s28 }
  0x2d   :  { %p690_p5 = scmp.ne.s32.totalorder %s48_s28, %s689_s0  ;;  %p695_p7 = scmp.lt.s32.totalorder %s689_s0, %s689_s0 }
  0x2f   :  { %p696_p8 = por %p695_p7, %p694_p6 }
  0x31   :  { %p697_p9 = pnand %p696_p8, %p690_p5 }
  0x33   :  { %700 = shalt.err (!%p697_p9)
}
  0x34   :  { %53 = dma.hbm_to_vmem [thread:$0]  %s932_s3, 1024, %s48_s28, [#allocation6], %s755_s13, %s755_s13, %s756_s14  }
  0x35   :  { %s701_s20 = scalar_lea.hbm %s934_s5, 1024 }
  0x36   :  { %p702_p10 = scmp.ne.s32.totalorder %s934_s5, %s701_s20  ;;  %p705_p11 = scmp.lt.u32.totalorder %s701_s20, %s934_s5 }
  0x38   :  { %p707_p12 = pnand %p705_p11, %p702_p10 }
  0x3a   :  { %710 = shalt.err (!%p707_p12)
}
  0x3b   :  { %s711_s1 = scalar_lea.vmem %s841_s30, 1024  ;;  %p716_p0 = scmp.lt.s32.totalorder %s841_s30, %s841_s30 }
  0x3c   :  { %p712_p13 = scmp.ne.s32.totalorder %s841_s30, %s711_s1  ;;  %p717_p1 = scmp.lt.s32.totalorder %s711_s1, %s711_s1 }
  0x3e   :  { %p718_p2 = por %p717_p1, %p716_p0 }
  0x40   :  { %p719_p3 = pnand %p718_p2, %p712_p13 }
  0x42   :  { %722 = shalt.err (!%p719_p3)
}
  0x43   :  { %67 = dma.hbm_to_vmem [thread:$0]  %s934_s5, 1024, %s841_s30, [#allocation9], %s755_s13, %s755_s13, %s756_s14  }
  0x44   :  { %745 = dma.done.wait [#allocation3], 128  }
  0x45   :  { %746 = vsyncadd [#allocation3], 4294967168 }
  0x46   :  { %747 = dma.done.wait [#allocation6], 2048  }
  0x47   :  { %748 = vsyncadd [#allocation6], 4294965248 }
  0x48   :  { %749 = dma.done.wait [#allocation9], 1024  }
  0x49   :  { %750 = vsyncadd [#allocation9], 4294966272  ;;  %v759_v0 = vmov 0.0   ;;  %vm760_vm0 = vmmov 0   ;;  %v602_v1 = vld [vmem:[#allocation5] sm:$0xff]   ;;  %v603_v2 = vld [vmem:[#allocation5 + $0x8] sm:$0xff]  }
  0x4a   :  { %531 = vmatprep.subr.bf16.mxu0 %v759_v0  ;;  %547 = vmatprep.mubr.msk.bf16.mxu0 %vm760_vm0, %v759_v0  ;;  %v604_v3 = vld [vmem:[#allocation5 + $0x10] sm:$0xff]   ;;  %v611_v4 = vld [vmem:[#allocation7] sm:$0xff]   ;;  %v605_v5 = vld [vmem:[#allocation5 + $0x18] sm:$0xff]  }
  0x4b   :  { %551 = vmatprep.subr.bf16.mxu1 %v759_v0  ;;  %567 = vmatprep.mubr.msk.bf16.mxu1 %vm760_vm0, %v759_v0  ;;  %v612_v6 = vld [vmem:[#allocation7 + $0x8] sm:$0xff]   ;;  %v606_v7 = vld [vmem:[#allocation5 + $0x20] sm:$0xff]   ;;  %v613_v8 = vld [vmem:[#allocation7 + $0x10] sm:$0xff]  }
  0x4c   :  { %532 = vmatpush3.bf16.msra.mxu0 %v602_v1  ;;  %552 = vmatpush3.bf16.msra.mxu1 %v611_v4  ;;  %v607_v9 = vld [vmem:[#allocation5 + $0x28] sm:$0xff]   ;;  %v614_v10 = vld [vmem:[#allocation7 + $0x18] sm:$0xff]   ;;  %v608_v11 = vld [vmem:[#allocation5 + $0x30] sm:$0xff]  }
  0x4d   :  { %533 = vmatprep.subr.bf16.mxu0 %v759_v0  ;;  %553 = vmatprep.subr.bf16.mxu1 %v759_v0  ;;  %v615_v12 = vld [vmem:[#allocation7 + $0x20] sm:$0xff]   ;;  %v609_v13 = vld [vmem:[#allocation5 + $0x38] sm:$0xff]   ;;  %v616_v14 = vld [vmem:[#allocation7 + $0x28] sm:$0xff]  }
  0x4e   :  { %v610_v15 = vld [vmem:[#allocation2] sm:$0xff]   ;;  %v617_v16 = vld [vmem:[#allocation7 + $0x30] sm:$0xff]   ;;  %v619_v18 = vld [vmem:[#allocation8] sm:$0xff]  }
  0x4f   :  { %v618_v17 = vld [vmem:[#allocation7 + $0x38] sm:$0xff]   ;;  %v620_v19 = vld [vmem:[#allocation8 + $0x8] sm:$0xff]   ;;  %v621_v20 = vld [vmem:[#allocation8 + $0x10] sm:$0xff]  }
  0x50   :  { %534 = vmatpush3.bf16.msra.mxu0 %v603_v2  ;;  %554 = vmatpush3.bf16.msra.mxu1 %v612_v6  ;;  %v622_v21 = vld [vmem:[#allocation8 + $0x18] sm:$0xff]   ;;  %v623_v22 = vld [vmem:[#allocation8 + $0x20] sm:$0xff]   ;;  %v624_v23 = vld [vmem:[#allocation8 + $0x28] sm:$0xff]  }
  0x51   :  { %535 = vmatprep.subr.bf16.mxu0 %v759_v0  ;;  %555 = vmatprep.subr.bf16.mxu1 %v759_v0  ;;  %v476_v24 = vld [vmem:[%s931_s2] ss:$0 sm:$0xff]  ;;  %v625_v34 = vld [vmem:[#allocation8 + $0x30] sm:$0xff]  }
  0x52   :  { %v626_v35 = vld [vmem:[#allocation8 + $0x38] sm:$0xff]  }
  0x53   :  { %v486_v36 = vld [vmem:[%s933_s4] ss:$0 sm:$0xff]  ;;  %s761_s4 = smov [#allocation10]  }
  0x54   :  { %536 = vmatpush3.bf16.msra.mxu0 %v604_v3  ;;  %556 = vmatpush3.bf16.msra.mxu1 %v613_v8  ;;  %v495_v46 = vld [vmem:[%s935_s6] ss:$0 sm:$0xff]  ;;  %s462_s6 = sshll.u32 %s761_s4, 4  ;;  %s463_s6 = int_to_ptr.vmem [resolvable:$true] %s462_s6 }
  0x55   :  { %537 = vmatprep.subr.bf16.mxu0 %v759_v0  ;;  %557 = vmatprep.subr.bf16.mxu1 %v759_v0  ;;  %s723_s29 = scalar_lea.vmem %s463_s6, 256  ;;  %p728_p5 = scmp.lt.s32.totalorder %s463_s6, %s463_s6 }
  0x56   :  { %p724_p4 = scmp.ne.s32.totalorder %s463_s6, %s723_s29  ;;  %p729_p6 = scmp.lt.s32.totalorder %s723_s29, %s723_s29 }
  0x58   :  { %538 = vmatpush3.bf16.msra.mxu0 %v605_v5  ;;  %558 = vmatpush3.bf16.msra.mxu1 %v614_v10  ;;  %p730_p7 = por %p729_p6, %p728_p5 }
  0x59   :  { %539 = vmatprep.subr.bf16.mxu0 %v759_v0  ;;  %559 = vmatprep.subr.bf16.mxu1 %v759_v0 }
  0x5a   :  { %p731_p8 = pnand %p730_p7, %p724_p4 }
  0x5c   :  { %540 = vmatpush3.bf16.msra.mxu0 %v606_v7  ;;  %560 = vmatpush3.bf16.msra.mxu1 %v615_v12 }
  0x5d   :  { %541 = vmatprep.subr.bf16.mxu0 %v759_v0  ;;  %561 = vmatprep.subr.bf16.mxu1 %v759_v0 }
  0x60   :  { %542 = vmatpush3.bf16.msra.mxu0 %v607_v9  ;;  %562 = vmatpush3.bf16.msra.mxu1 %v616_v14 }
  0x61   :  { %543 = vmatprep.subr.bf16.mxu0 %v759_v0  ;;  %563 = vmatprep.subr.bf16.mxu1 %v759_v0 }
  0x64   :  { %544 = vmatpush3.bf16.msra.mxu0 %v608_v11  ;;  %564 = vmatpush3.bf16.msra.mxu1 %v617_v16 }
  0x65   :  { %545 = vmatprep.subr.bf16.mxu0 %v759_v0  ;;  %565 = vmatprep.subr.bf16.mxu1 %v759_v0 }
  0x68   :  { %546 = vmatpush3.bf16.msra.mxu0 %v609_v13  ;;  %566 = vmatpush3.bf16.msra.mxu1 %v618_v17 }
  0x69   :  { %571 = vmatprep.subr.bf16.mxu0 %v759_v0 }
  0x6b   :  { %548 = vmatmul.mubr.bf16.vlgmr.msra.gmra.mrb[0].mxu0 %v610_v15 }
  0x6c   :  { %587 = vmatprep.mubr.msk.bf16.mxu0 %vm760_vm0, %v759_v0  ;;  %572 = vmatpush3.bf16.msra.mxu0 %v619_v18 }
  0x6d   :  { %573 = vmatprep.subr.bf16.mxu0 %v759_v0 }
  0x70   :  { %574 = vmatpush3.bf16.msra.mxu0 %v620_v19 }
  0x71   :  { %575 = vmatprep.subr.bf16.mxu0 %v759_v0 }
  0x74   :  { %576 = vmatpush3.bf16.msra.mxu0 %v621_v20 }
  0x75   :  { %577 = vmatprep.subr.bf16.mxu0 %v759_v0 }
  0x78   :  { %578 = vmatpush3.bf16.msra.mxu0 %v622_v21 }
  0x79   :  { %579 = vmatprep.subr.bf16.mxu0 %v759_v0 }
  0x7c   :  { %580 = vmatpush3.bf16.msra.mxu0 %v623_v22 }
  0x7d   :  { %581 = vmatprep.subr.bf16.mxu0 %v759_v0 }
  0x80   :  { %582 = vmatpush3.bf16.msra.mxu0 %v624_v23 }
  0x81   :  { %583 = vmatprep.subr.bf16.mxu0 %v759_v0 }
  0x84   :  { %584 = vmatpush3.bf16.msra.mxu0 %v625_v34 }
  0x85   :  { %585 = vmatprep.subr.bf16.mxu0 %v759_v0 }
  0x88   :  { %586 = vmatpush3.bf16.msra.mxu0 %v626_v35 }
 0x13e   :  { %v196_v25 = vpop.f32.mrb[0].mxu0 }
 0x13f   :  { %v197_v26 = vadd.f32 %v476_v24, %v196_v25  ;;  %v549_v27 = vpop.f32.mrb[1].mxu0 }
 0x140   :  { %v199_v28 = vpop.f32.mrb[2].mxu0 }
 0x141   :  { %v200_v29 = vadd.f32 %v476_v24, %v199_v28  ;;  %v550_v30 = vpop.f32.mrb[3].mxu0  ;;  %v203_v31 = vmax.f32 %v197_v26, 0.0 }
 0x143   :  { %v204_v32 = vmax.f32 %v200_v29, 0.0 }
 0x145   :  { %v205_v33 = vpack.c.bf16 %v204_v32, %v203_v31 }
 0x147   :  { %568 = vmatmul.mubr.bf16.vlgmr.msra.gmra.mrb[0].mxu1 %v205_v33 }
 0x21a   :  { %v311_v37 = vpop.f32.mrb[0].mxu1 }
 0x21b   :  { %v312_v38 = vadd.f32 %v486_v36, %v311_v37  ;;  %v569_v39 = vpop.f32.mrb[1].mxu1 }
 0x21c   :  { %v314_v40 = vpop.f32.mrb[2].mxu1 }
 0x21d   :  { %v315_v41 = vadd.f32 %v486_v36, %v314_v40  ;;  %v570_v42 = vpop.f32.mrb[3].mxu1  ;;  %v318_v43 = vmax.f32 %v312_v38, 0.0 }
 0x21f   :  { %v319_v44 = vmax.f32 %v315_v41, 0.0 }
 0x221   :  { %v320_v45 = vpack.c.bf16 %v319_v44, %v318_v43 }
 0x223   :  { %588 = vmatmul.mubr.bf16.vlgmr.msra.gmra.mrb[4].mxu0 %v320_v45 }
 0x2f6   :  { %v426_v47 = vpop.f32.mrb[4].mxu0 }
 0x2f7   :  { %v427_v48 = vadd.f32 %v495_v46, %v426_v47  ;;  %v589_v49 = vpop.f32.mrb[5].mxu0 }
 0x2f8   :  { %v429_v50 = vpop.f32.mrb[6].mxu0 }
 0x2f9   :  { %433 = vmax.xlane.f32.xlu0 %v427_v48  ;;  %v590_v51 = vpop.f32.mrb[7].mxu0  ;;  %v430_v52 = vadd.f32 %v495_v46, %v429_v50 }
 0x2fd   :  { %435 = vmax.xlane.f32.xlu0 %v430_v52 }
 0x386   :  { %v434_v53 = vpop.xlane.xlu0 %433 }
 0x387   :  { %v437_v54 = vsub.f32 %v427_v48, %v434_v53 }
 0x389   :  { %v439_v55 = vmul.f32 1.442695, %v437_v54 }
 0x38a   :  { %v436_v56 = vpop.xlane.xlu0 %435 }
 0x38b   :  { %v438_v57 = vsub.f32 %v430_v52, %v436_v56  ;;  %627 = vpow2.f32 %v439_v55 }
 0x38d   :  { %v441_v58 = vmul.f32 1.442695, %v438_v57 }
 0x38f   :  { %629 = vpow2.f32 %v441_v58 }
 0x395   :  { %v628_v59 = vpop.eup %627 }
 0x396   :  { %443 = vadd.xlane.f32.xlu1 %v628_v59 }
 0x399   :  { %v630_v60 = vpop.eup %629 }
 0x39a   :  { %445 = vadd.xlane.f32.xlu1 %v630_v60 }
 0x423   :  { %v444_v61 = vpop.xlane.xlu1 %443 }
 0x424   :  { %631 = vlog2.f32 %v444_v61 }
 0x427   :  { %v446_v62 = vpop.xlane.xlu1 %445 }
 0x428   :  { %633 = vlog2.f32 %v446_v62 }
 0x42e   :  { %v632_v63 = vpop.eup %631 }
 0x42f   :  { %v448_v0 = vmul.f32 0.6931472, %v632_v63 }
 0x431   :  { %v451_v1 = vadd.f32 %v448_v0, %v434_v53 }
 0x432   :  { %v634_v2 = vpop.eup %633 }
 0x433   :  { %v453_v3 = vsub.f32 %v427_v48, %v451_v1  ;;  %v450_v4 = vmul.f32 0.6931472, %v634_v2 }
 0x435   :  { %455 = vst [vmem:[#allocation10] sm:$0xff] %v453_v3  ;;  %v452_v5 = vadd.f32 %v450_v4, %v436_v56 }
 0x437   :  { %v454_v6 = vsub.f32 %v430_v52, %v452_v5 }
 0x439   :  { %456 = vst [vmem:[#allocation10 + $0x8] sm:$0xff] %v454_v6 }
 0x43a   :  { %734 = shalt.err (!%p731_p8)
}
 0x43b   :  { %s735_s9 = scalar_lea.hbm %s936_s7, 256 }
 0x43c   :  { %p736_p9 = scmp.ne.s32.totalorder %s936_s7, %s735_s9  ;;  %p739_p10 = scmp.lt.u32.totalorder %s735_s9, %s936_s7 }
 0x43e   :  { %p741_p11 = pnand %p739_p10, %p736_p9 }
 0x440   :  { %744 = shalt.err (!%p741_p11)
}
 0x441   :  { %s762_s16 = smov 128   ;;  %s763_s0 = smov 8  }
 0x442   :  { %468 = dma.vmem_to_hbm [thread:$0]  %s463_s6, 256, %s936_s7, [#allocation4], %s762_s16, %s762_s16, %s763_s0  }
 0x443   :  { %751 = dma.done.wait [#allocation4], 256  }
 0x444   :  { %752 = vsyncadd [#allocation4], 4294967040 }
 0x445   :  { %472 = vsyncpa [#allocation3], 1 }
 0x446   :  { %473 = vsyncpa [#allocation6], 1 }
 0x447   :  { %474 = vsyncpa [#allocation9], 1 }
 0x448   :  { %475 = vsyncpa [#allocation4], 1 }

</bundles_post_ra>
